<compile_context>
chip_gen: v7x
topology: tpu7x:2x2x1
jax: 0.10.0
libtpu: 0.0.40
codegen_flags: <defaults>
</compile_context>

<pallas_src>
import functools
import math

import jax
import jax.numpy as jnp
from jax.experimental import pallas as pl
from jax.experimental.pallas import tpu as pltpu


# ---------------------------------------------------------------------------
# Small helpers
# ---------------------------------------------------------------------------

def _vmem_capacity_bytes():
    """Per-TensorCore VMEM capacity; conservative fallback (v7x = 64 MiB)."""
    try:
        info = pltpu.get_tpu_info()
        cap = getattr(info, "vmem_capacity_bytes", None)
        if cap:
            return int(cap)
    except Exception:
        pass
    return 64 * 1024 * 1024


def _pick_row_tile(rows, feat, in_item, out_item, sublane, vmem_cap):
    """Adaptive row tile: ~2 MiB of f32 per tile, VMEM-budget capped,
    sublane aligned, and always >= 2 grid steps when rows allow (v7x 2 TCs)."""
    if rows <= sublane:
        return rows  # full-extent block is always legal
    target_bytes = 2 << 20                                   # ~2 MiB f32 tile
    tm = max(sublane, target_bytes // (feat * 4))
    # double-buffered in + out tiles plus ~2 f32 working copies <= 40% of VMEM
    per_row = feat * (2 * in_item + 2 * out_item + 2 * 4)
    tm_cap = max(sublane, int(vmem_cap * 0.4) // per_row)
    tm = min(tm, tm_cap)
    tm = max(sublane, (tm // sublane) * sublane)
    # never a single grid step: split into >= 2 blocks so the parallel axis
    # can shard across both TensorCores on v7x (no effect on v5e/v6e).
    half = -(-rows // 2)
    half = -(-half // sublane) * sublane
    return min(tm, half)


def _fast_reciprocal(d):
    """1/d: EUP approximate reciprocal + 2 Newton steps (~exact f32)."""
    r = pl.reciprocal(d, approx=True)
    r = r * (2.0 - d * r)
    r = r * (2.0 - d * r)
    return r


def _moments(s1, s2, feat):
    """Unbiased variance from one-pass sums (torch.Tensor.std semantics)."""
    n = jnp.float32(feat)
    mean = s1 / n
    var = (s2 - n * mean * mean) / (n - 1.0)
    return mean, jnp.maximum(var, 0.0)


# ---------------------------------------------------------------------------
# Kernels
# ---------------------------------------------------------------------------

def _layer_norm_kernel(x_ref, gamma_ref, beta_ref, o_ref, *, eps, feat):
    # x: (tm, feat)   gamma/beta: (1, feat) f32   o: (tm, feat)
    x = x_ref[...].astype(jnp.float32)
    s1 = jnp.sum(x, axis=-1, keepdims=True)          # one-pass moments:
    s2 = jnp.sum(x * x, axis=-1, keepdims=True)      # independent reduces
    mean, var = _moments(s1, s2, feat)
    inv = _fast_reciprocal(jnp.sqrt(var) + jnp.float32(eps))   # (tm, 1)
    y = gamma_ref[...] * ((x - mean) * inv) + beta_ref[...]
    o_ref[...] = y.astype(o_ref.dtype)


def _layer_norm_folded_kernel(x_ref, gamma_ref, beta_ref, o_ref, *, eps, feat, k):
    # Lane-dense small-feat path: each lane row holds k original rows of width
    # feat (k * feat == 128). Segmented masked reductions per original row.
    x = x_ref[...].astype(jnp.float32)                # (tm, k*feat)
    xx = x * x
    lane = jax.lax.broadcasted_iota(jnp.int32, x.shape, 1)
    mean_b = jnp.zeros_like(x)
    inv_b = jnp.zeros_like(x)
    for g in range(k):                                # static unroll, k <= 16
        m = (lane >= g * feat) & (lane < (g + 1) * feat)
        s1 = jnp.sum(jnp.where(m, x, 0.0), axis=-1, keepdims=True)
        s2 = jnp.sum(jnp.where(m, xx, 0.0), axis=-1, keepdims=True)
        mean, var = _moments(s1, s2, feat)
        inv = _fast_reciprocal(jnp.sqrt(var) + jnp.float32(eps))
        mean_b = jnp.where(m, mean, mean_b)
        inv_b = jnp.where(m, inv, inv_b)
    y = gamma_ref[...] * ((x - mean_b) * inv_b) + beta_ref[...]
    o_ref[...] = y.astype(o_ref.dtype)


# ---------------------------------------------------------------------------
# Wrapper
# ---------------------------------------------------------------------------

def layer_norm_pallas(x, a_2, b_2, eps=1e-6):
    """LayerNorm over the last axis of x. a_2/b_2: (features,)."""
    orig_shape = x.shape
    feat = orig_shape[-1]
    # TODO(synk): feat == 1 yields nan (unbiased std of one element), exactly
    # like the PyTorch module; not guarded here.
    rows = math.prod(orig_shape[:-1])

    x2 = x.reshape(rows, feat)
    gamma = a_2.astype(jnp.float32).reshape(1, feat)
    beta = b_2.astype(jnp.float32).reshape(1, feat)

    # Lane-dense fold when the feature width is narrower than one vreg lane row.
    k = 1
    if feat < 128 and 128 % feat == 0 and rows % (128 // feat) == 0:
        k = 128 // feat
    rows_eff = rows // k
    feat_eff = feat * k
    if k > 1:
        x2 = x2.reshape(rows_eff, feat_eff)           # contiguous -> free reshape
        gamma = jnp.tile(gamma, (1, k))
        beta = jnp.tile(beta, (1, k))
        kernel = functools.partial(_layer_norm_folded_kernel, eps=eps, feat=feat, k=k)
    else:
        kernel = functools.partial(_layer_norm_kernel, eps=eps, feat=feat)

    in_item = x.dtype.itemsize
    out_item = in_item
    sublane = max(8, 32 // in_item)                   # 8 f32 / 16 bf16 / 32 int8
    vmem_cap = _vmem_capacity_bytes()

    tm = _pick_row_tile(rows_eff, feat_eff, in_item, out_item, sublane, vmem_cap)
    grid = (pl.cdiv(rows_eff, tm),)

    resident = tm * feat_eff * (2 * in_item + 2 * out_item + 2 * 4) + 2 * feat_eff * 4
    vmem_limit = min(int(vmem_cap * 0.7), max(resident + (4 << 20), 32 << 20))

    cost = pl.CostEstimate(
        flops=10 * rows * feat,
        transcendentals=2 * rows,
        bytes_accessed=rows * feat * (in_item + out_item) + 2 * feat * 4,
    )

    out = pl.pallas_call(
        kernel,
        out_shape=jax.ShapeDtypeStruct((rows_eff, feat_eff), x.dtype),
        grid=grid,
        in_specs=[
            pl.BlockSpec((tm, feat_eff), lambda i: (i, 0)),
            pl.BlockSpec((1, feat_eff), lambda i: (0, 0)),
            pl.BlockSpec((1, feat_eff), lambda i: (0, 0)),
        ],
        out_specs=pl.BlockSpec((tm, feat_eff), lambda i: (i, 0)),
        compiler_params=pltpu.CompilerParams(
            dimension_semantics=("parallel",),
            vmem_limit_bytes=int(vmem_limit),
        ),
        cost_estimate=cost,
    )(x2, gamma, beta)

    return out.reshape(orig_shape)


# ---------------------------------------------------------------------------
# Pure-JAX reference (torch semantics: unbiased std, eps added to std)
# ---------------------------------------------------------------------------

def reference_layer_norm(x, a_2, b_2, eps=1e-6):
    x32 = x.astype(jnp.float32)
    mean = jnp.mean(x32, axis=-1, keepdims=True)
    std = jnp.std(x32, axis=-1, keepdims=True, ddof=1)
    return (a_2 * (x32 - mean) / (std + eps) + b_2).astype(x.dtype)


# ---------------------------------------------------------------------------
# Main
# ---------------------------------------------------------------------------

if __name__ == "__main__":
    key = jax.random.PRNGKey(0)
    eps = 1e-6
    # (batch, seq, n_embd): small-feat case exercises the lane-dense fold
    # (k = 128 // 32 = 4); 256-wide case exercises the per-row fast path.
    for shape in [(2, 8, 32), (2, 8, 256)]:
        E = shape[-1]
        key, kx, ka, kb = jax.random.split(key, 4)
        x = jax.random.normal(kx, shape, jnp.float32)
        # Module init is ones/zeros; perturb so the affine path is exercised.
        a_2 = 1.0 + 0.1 * jax.random.normal(ka, (E,), jnp.float32)
        b_2 = 0.1 * jax.random.normal(kb, (E,), jnp.float32)

        out = jax.block_until_ready(layer_norm_pallas(x, a_2, b_2, eps))
        ref = reference_layer_norm(x, a_2, b_2, eps)
        assert out.shape == shape
        assert jnp.allclose(out, ref, atol=1e-5, rtol=1e-5), f"mismatch at {shape}"

    print("KERNEL_OK")
</pallas_src>

<mosaic_0001>
module attributes {stable_mosaic.version = 11 : i64} {
  func.func @_layer_norm_folded_kernel(%arg0: i32, %arg1: memref<4x128xf32, #tpu.memory_space<vmem>>, %arg2: memref<1x128xf32, #tpu.memory_space<vmem>>, %arg3: memref<1x128xf32, #tpu.memory_space<vmem>>, %arg4: memref<4x128xf32, #tpu.memory_space<vmem>>) attributes {dimension_semantics = [#tpu.dimension_semantics<parallel>], iteration_bounds = array<i64: 1>, scalar_prefetch = 0 : i64, scratch_operands = 0 : i64, tpu.core_type = #tpu.core_type<tc>, window_params = [{transform_indices = @transform_0, window_bounds = array<i64: 4, 128>}, {pipeline_mode = #tpu.pipeline_mode<synchronous>, transform_indices = @transform_1, window_bounds = array<i64: 1, 128>}, {pipeline_mode = #tpu.pipeline_mode<synchronous>, transform_indices = @transform_2, window_bounds = array<i64: 1, 128>}, {transform_indices = @transform_3, window_bounds = array<i64: 4, 128>}]} {
    %c0 = arith.constant 0 : index
    %c0_0 = arith.constant 0 : index
    %0 = vector.load %arg1[%c0, %c0_0] : memref<4x128xf32, #tpu.memory_space<vmem>>, vector<4x128xf32>
    %1 = arith.mulf %0, %0 : vector<4x128xf32>
    %2 = tpu.iota {dimensions = array<i32: 1>} : vector<4x128xi32>
    %cst = arith.constant 0.000000e+00 : f32
    %3 = vector.broadcast %cst : f32 to vector<4x128xf32>
    %cst_1 = arith.constant 0.000000e+00 : f32
    %4 = vector.broadcast %cst_1 : f32 to vector<4x128xf32>
    %c0_i32 = arith.constant 0 : i32
    %5 = vector.broadcast %c0_i32 : i32 to vector<4x128xi32>
    %6 = arith.cmpi sge, %2, %5 : vector<4x128xi32>
    %c32_i32 = arith.constant 32 : i32
    %7 = vector.broadcast %c32_i32 : i32 to vector<4x128xi32>
    %8 = arith.cmpi slt, %2, %7 : vector<4x128xi32>
    %9 = arith.andi %6, %8 : vector<4x128xi1>
    %cst_2 = arith.constant 0.000000e+00 : f32
    %10 = vector.broadcast %cst_2 : f32 to vector<4x128xf32>
    %11 = arith.select %9, %0, %10 : vector<4x128xi1>, vector<4x128xf32>
    %cst_3 = arith.constant dense<0.000000e+00> : vector<4xf32>
    %12 = vector.multi_reduction <add>, %11, %cst_3 [1] : vector<4x128xf32> to vector<4xf32>
    %13 = vector.shape_cast %12 : vector<4xf32> to vector<4x1xf32>
    %cst_4 = arith.constant 0.000000e+00 : f32
    %14 = vector.broadcast %cst_4 : f32 to vector<4x128xf32>
    %15 = arith.select %9, %1, %14 : vector<4x128xi1>, vector<4x128xf32>
    %cst_5 = arith.constant dense<0.000000e+00> : vector<4xf32>
    %16 = vector.multi_reduction <add>, %15, %cst_5 [1] : vector<4x128xf32> to vector<4xf32>
    %17 = vector.shape_cast %16 : vector<4xf32> to vector<4x1xf32>
    %cst_6 = arith.constant 3.200000e+01 : f32
    %18 = vector.broadcast %cst_6 : f32 to vector<4x1xf32>
    %19 = arith.divf %13, %18 : vector<4x1xf32>
    %cst_7 = arith.constant 3.200000e+01 : f32
    %20 = vector.broadcast %cst_7 : f32 to vector<4x1xf32>
    %21 = arith.mulf %20, %19 : vector<4x1xf32>
    %22 = arith.mulf %21, %19 : vector<4x1xf32>
    %23 = arith.subf %17, %22 : vector<4x1xf32>
    %cst_8 = arith.constant 3.200000e+01 : f32
    %cst_9 = arith.constant 1.000000e+00 : f32
    %24 = arith.subf %cst_8, %cst_9 : f32
    %25 = vector.broadcast %24 : f32 to vector<4x1xf32>
    %26 = arith.divf %23, %25 : vector<4x1xf32>
    %cst_10 = arith.constant 0.000000e+00 : f32
    %27 = vector.broadcast %cst_10 : f32 to vector<4x1xf32>
    %28 = arith.maximumf %26, %27 : vector<4x1xf32>
    %29 = math.sqrt %28 : vector<4x1xf32>
    %cst_11 = arith.constant 9.99999997E-7 : f32
    %30 = vector.broadcast %cst_11 : f32 to vector<4x1xf32>
    %31 = arith.addf %29, %30 : vector<4x1xf32>
    %32 = tpu.reciprocal %31 {approx = true} : vector<4x1xf32> -> vector<4x1xf32>
    %33 = arith.mulf %31, %32 : vector<4x1xf32>
    %cst_12 = arith.constant 2.000000e+00 : f32
    %34 = vector.broadcast %cst_12 : f32 to vector<4x1xf32>
    %35 = arith.subf %34, %33 : vector<4x1xf32>
    %36 = arith.mulf %32, %35 : vector<4x1xf32>
    %37 = arith.mulf %31, %36 : vector<4x1xf32>
    %cst_13 = arith.constant 2.000000e+00 : f32
    %38 = vector.broadcast %cst_13 : f32 to vector<4x1xf32>
    %39 = arith.subf %38, %37 : vector<4x1xf32>
    %40 = arith.mulf %36, %39 : vector<4x1xf32>
    %41 = vector.shape_cast %19 : vector<4x1xf32> to vector<4x1xf32>
    %42 = vector.broadcast %41 : vector<4x1xf32> to vector<4x128xf32>
    %43 = arith.select %9, %42, %3 : vector<4x128xi1>, vector<4x128xf32>
    %44 = vector.shape_cast %40 : vector<4x1xf32> to vector<4x1xf32>
    %45 = vector.broadcast %44 : vector<4x1xf32> to vector<4x128xf32>
    %46 = arith.select %9, %45, %4 : vector<4x128xi1>, vector<4x128xf32>
    %c32_i32_14 = arith.constant 32 : i32
    %47 = vector.broadcast %c32_i32_14 : i32 to vector<4x128xi32>
    %48 = arith.cmpi sge, %2, %47 : vector<4x128xi32>
    %c64_i32 = arith.constant 64 : i32
    %49 = vector.broadcast %c64_i32 : i32 to vector<4x128xi32>
    %50 = arith.cmpi slt, %2, %49 : vector<4x128xi32>
    %51 = arith.andi %48, %50 : vector<4x128xi1>
    %cst_15 = arith.constant 0.000000e+00 : f32
    %52 = vector.broadcast %cst_15 : f32 to vector<4x128xf32>
    %53 = arith.select %51, %0, %52 : vector<4x128xi1>, vector<4x128xf32>
    %cst_16 = arith.constant dense<0.000000e+00> : vector<4xf32>
    %54 = vector.multi_reduction <add>, %53, %cst_16 [1] : vector<4x128xf32> to vector<4xf32>
    %55 = vector.shape_cast %54 : vector<4xf32> to vector<4x1xf32>
    %cst_17 = arith.constant 0.000000e+00 : f32
    %56 = vector.broadcast %cst_17 : f32 to vector<4x128xf32>
    %57 = arith.select %51, %1, %56 : vector<4x128xi1>, vector<4x128xf32>
    %cst_18 = arith.constant dense<0.000000e+00> : vector<4xf32>
    %58 = vector.multi_reduction <add>, %57, %cst_18 [1] : vector<4x128xf32> to vector<4xf32>
    %59 = vector.shape_cast %58 : vector<4xf32> to vector<4x1xf32>
    %cst_19 = arith.constant 3.200000e+01 : f32
    %60 = vector.broadcast %cst_19 : f32 to vector<4x1xf32>
    %61 = arith.divf %55, %60 : vector<4x1xf32>
    %cst_20 = arith.constant 3.200000e+01 : f32
    %62 = vector.broadcast %cst_20 : f32 to vector<4x1xf32>
    %63 = arith.mulf %62, %61 : vector<4x1xf32>
    %64 = arith.mulf %63, %61 : vector<4x1xf32>
    %65 = arith.subf %59, %64 : vector<4x1xf32>
    %cst_21 = arith.constant 3.200000e+01 : f32
    %cst_22 = arith.constant 1.000000e+00 : f32
    %66 = arith.subf %cst_21, %cst_22 : f32
    %67 = vector.broadcast %66 : f32 to vector<4x1xf32>
    %68 = arith.divf %65, %67 : vector<4x1xf32>
    %cst_23 = arith.constant 0.000000e+00 : f32
    %69 = vector.broadcast %cst_23 : f32 to vector<4x1xf32>
    %70 = arith.maximumf %68, %69 : vector<4x1xf32>
    %71 = math.sqrt %70 : vector<4x1xf32>
    %cst_24 = arith.constant 9.99999997E-7 : f32
    %72 = vector.broadcast %cst_24 : f32 to vector<4x1xf32>
    %73 = arith.addf %71, %72 : vector<4x1xf32>
    %74 = tpu.reciprocal %73 {approx = true} : vector<4x1xf32> -> vector<4x1xf32>
    %75 = arith.mulf %73, %74 : vector<4x1xf32>
    %cst_25 = arith.constant 2.000000e+00 : f32
    %76 = vector.broadcast %cst_25 : f32 to vector<4x1xf32>
    %77 = arith.subf %76, %75 : vector<4x1xf32>
    %78 = arith.mulf %74, %77 : vector<4x1xf32>
    %79 = arith.mulf %73, %78 : vector<4x1xf32>
    %cst_26 = arith.constant 2.000000e+00 : f32
    %80 = vector.broadcast %cst_26 : f32 to vector<4x1xf32>
    %81 = arith.subf %80, %79 : vector<4x1xf32>
    %82 = arith.mulf %78, %81 : vector<4x1xf32>
    %83 = vector.shape_cast %61 : vector<4x1xf32> to vector<4x1xf32>
    %84 = vector.broadcast %83 : vector<4x1xf32> to vector<4x128xf32>
    %85 = arith.select %51, %84, %43 : vector<4x128xi1>, vector<4x128xf32>
    %86 = vector.shape_cast %82 : vector<4x1xf32> to vector<4x1xf32>
    %87 = vector.broadcast %86 : vector<4x1xf32> to vector<4x128xf32>
    %88 = arith.select %51, %87, %46 : vector<4x128xi1>, vector<4x128xf32>
    %c64_i32_27 = arith.constant 64 : i32
    %89 = vector.broadcast %c64_i32_27 : i32 to vector<4x128xi32>
    %90 = arith.cmpi sge, %2, %89 : vector<4x128xi32>
    %c96_i32 = arith.constant 96 : i32
    %91 = vector.broadcast %c96_i32 : i32 to vector<4x128xi32>
    %92 = arith.cmpi slt, %2, %91 : vector<4x128xi32>
    %93 = arith.andi %90, %92 : vector<4x128xi1>
    %cst_28 = arith.constant 0.000000e+00 : f32
    %94 = vector.broadcast %cst_28 : f32 to vector<4x128xf32>
    %95 = arith.select %93, %0, %94 : vector<4x128xi1>, vector<4x128xf32>
    %cst_29 = arith.constant dense<0.000000e+00> : vector<4xf32>
    %96 = vector.multi_reduction <add>, %95, %cst_29 [1] : vector<4x128xf32> to vector<4xf32>
    %97 = vector.shape_cast %96 : vector<4xf32> to vector<4x1xf32>
    %cst_30 = arith.constant 0.000000e+00 : f32
    %98 = vector.broadcast %cst_30 : f32 to vector<4x128xf32>
    %99 = arith.select %93, %1, %98 : vector<4x128xi1>, vector<4x128xf32>
    %cst_31 = arith.constant dense<0.000000e+00> : vector<4xf32>
    %100 = vector.multi_reduction <add>, %99, %cst_31 [1] : vector<4x128xf32> to vector<4xf32>
    %101 = vector.shape_cast %100 : vector<4xf32> to vector<4x1xf32>
    %cst_32 = arith.constant 3.200000e+01 : f32
    %102 = vector.broadcast %cst_32 : f32 to vector<4x1xf32>
    %103 = arith.divf %97, %102 : vector<4x1xf32>
    %cst_33 = arith.constant 3.200000e+01 : f32
    %104 = vector.broadcast %cst_33 : f32 to vector<4x1xf32>
    %105 = arith.mulf %104, %103 : vector<4x1xf32>
    %106 = arith.mulf %105, %103 : vector<4x1xf32>
    %107 = arith.subf %101, %106 : vector<4x1xf32>
    %cst_34 = arith.constant 3.200000e+01 : f32
    %cst_35 = arith.constant 1.000000e+00 : f32
    %108 = arith.subf %cst_34, %cst_35 : f32
    %109 = vector.broadcast %108 : f32 to vector<4x1xf32>
    %110 = arith.divf %107, %109 : vector<4x1xf32>
    %cst_36 = arith.constant 0.000000e+00 : f32
    %111 = vector.broadcast %cst_36 : f32 to vector<4x1xf32>
    %112 = arith.maximumf %110, %111 : vector<4x1xf32>
    %113 = math.sqrt %112 : vector<4x1xf32>
    %cst_37 = arith.constant 9.99999997E-7 : f32
    %114 = vector.broadcast %cst_37 : f32 to vector<4x1xf32>
    %115 = arith.addf %113, %114 : vector<4x1xf32>
    %116 = tpu.reciprocal %115 {approx = true} : vector<4x1xf32> -> vector<4x1xf32>
    %117 = arith.mulf %115, %116 : vector<4x1xf32>
    %cst_38 = arith.constant 2.000000e+00 : f32
    %118 = vector.broadcast %cst_38 : f32 to vector<4x1xf32>
    %119 = arith.subf %118, %117 : vector<4x1xf32>
    %120 = arith.mulf %116, %119 : vector<4x1xf32>
    %121 = arith.mulf %115, %120 : vector<4x1xf32>
    %cst_39 = arith.constant 2.000000e+00 : f32
    %122 = vector.broadcast %cst_39 : f32 to vector<4x1xf32>
    %123 = arith.subf %122, %121 : vector<4x1xf32>
    %124 = arith.mulf %120, %123 : vector<4x1xf32>
    %125 = vector.shape_cast %103 : vector<4x1xf32> to vector<4x1xf32>
    %126 = vector.broadcast %125 : vector<4x1xf32> to vector<4x128xf32>
    %127 = arith.select %93, %126, %85 : vector<4x128xi1>, vector<4x128xf32>
    %128 = vector.shape_cast %124 : vector<4x1xf32> to vector<4x1xf32>
    %129 = vector.broadcast %128 : vector<4x1xf32> to vector<4x128xf32>
    %130 = arith.select %93, %129, %88 : vector<4x128xi1>, vector<4x128xf32>
    %c96_i32_40 = arith.constant 96 : i32
    %131 = vector.broadcast %c96_i32_40 : i32 to vector<4x128xi32>
    %132 = arith.cmpi sge, %2, %131 : vector<4x128xi32>
    %c128_i32 = arith.constant 128 : i32
    %133 = vector.broadcast %c128_i32 : i32 to vector<4x128xi32>
    %134 = arith.cmpi slt, %2, %133 : vector<4x128xi32>
    %135 = arith.andi %132, %134 : vector<4x128xi1>
    %cst_41 = arith.constant 0.000000e+00 : f32
    %136 = vector.broadcast %cst_41 : f32 to vector<4x128xf32>
    %137 = arith.select %135, %0, %136 : vector<4x128xi1>, vector<4x128xf32>
    %cst_42 = arith.constant dense<0.000000e+00> : vector<4xf32>
    %138 = vector.multi_reduction <add>, %137, %cst_42 [1] : vector<4x128xf32> to vector<4xf32>
    %139 = vector.shape_cast %138 : vector<4xf32> to vector<4x1xf32>
    %cst_43 = arith.constant 0.000000e+00 : f32
    %140 = vector.broadcast %cst_43 : f32 to vector<4x128xf32>
    %141 = arith.select %135, %1, %140 : vector<4x128xi1>, vector<4x128xf32>
    %cst_44 = arith.constant dense<0.000000e+00> : vector<4xf32>
    %142 = vector.multi_reduction <add>, %141, %cst_44 [1] : vector<4x128xf32> to vector<4xf32>
    %143 = vector.shape_cast %142 : vector<4xf32> to vector<4x1xf32>
    %cst_45 = arith.constant 3.200000e+01 : f32
    %144 = vector.broadcast %cst_45 : f32 to vector<4x1xf32>
    %145 = arith.divf %139, %144 : vector<4x1xf32>
    %cst_46 = arith.constant 3.200000e+01 : f32
    %146 = vector.broadcast %cst_46 : f32 to vector<4x1xf32>
    %147 = arith.mulf %146, %145 : vector<4x1xf32>
    %148 = arith.mulf %147, %145 : vector<4x1xf32>
    %149 = arith.subf %143, %148 : vector<4x1xf32>
    %cst_47 = arith.constant 3.200000e+01 : f32
    %cst_48 = arith.constant 1.000000e+00 : f32
    %150 = arith.subf %cst_47, %cst_48 : f32
    %151 = vector.broadcast %150 : f32 to vector<4x1xf32>
    %152 = arith.divf %149, %151 : vector<4x1xf32>
    %cst_49 = arith.constant 0.000000e+00 : f32
    %153 = vector.broadcast %cst_49 : f32 to vector<4x1xf32>
    %154 = arith.maximumf %152, %153 : vector<4x1xf32>
    %155 = math.sqrt %154 : vector<4x1xf32>
    %cst_50 = arith.constant 9.99999997E-7 : f32
    %156 = vector.broadcast %cst_50 : f32 to vector<4x1xf32>
    %157 = arith.addf %155, %156 : vector<4x1xf32>
    %158 = tpu.reciprocal %157 {approx = true} : vector<4x1xf32> -> vector<4x1xf32>
    %159 = arith.mulf %157, %158 : vector<4x1xf32>
    %cst_51 = arith.constant 2.000000e+00 : f32
    %160 = vector.broadcast %cst_51 : f32 to vector<4x1xf32>
    %161 = arith.subf %160, %159 : vector<4x1xf32>
    %162 = arith.mulf %158, %161 : vector<4x1xf32>
    %163 = arith.mulf %157, %162 : vector<4x1xf32>
    %cst_52 = arith.constant 2.000000e+00 : f32
    %164 = vector.broadcast %cst_52 : f32 to vector<4x1xf32>
    %165 = arith.subf %164, %163 : vector<4x1xf32>
    %166 = arith.mulf %162, %165 : vector<4x1xf32>
    %167 = vector.shape_cast %145 : vector<4x1xf32> to vector<4x1xf32>
    %168 = vector.broadcast %167 : vector<4x1xf32> to vector<4x128xf32>
    %169 = arith.select %135, %168, %127 : vector<4x128xi1>, vector<4x128xf32>
    %170 = vector.shape_cast %166 : vector<4x1xf32> to vector<4x1xf32>
    %171 = vector.broadcast %170 : vector<4x1xf32> to vector<4x128xf32>
    %172 = arith.select %135, %171, %130 : vector<4x128xi1>, vector<4x128xf32>
    %c0_53 = arith.constant 0 : index
    %c0_54 = arith.constant 0 : index
    %173 = vector.load %arg2[%c0_53, %c0_54] : memref<1x128xf32, #tpu.memory_space<vmem>>, vector<1x128xf32>
    %174 = arith.subf %0, %169 : vector<4x128xf32>
    %175 = arith.mulf %174, %172 : vector<4x128xf32>
    %176 = vector.broadcast %173 : vector<1x128xf32> to vector<4x128xf32>
    %177 = arith.mulf %176, %175 : vector<4x128xf32>
    %c0_55 = arith.constant 0 : index
    %c0_56 = arith.constant 0 : index
    %178 = vector.load %arg3[%c0_55, %c0_56] : memref<1x128xf32, #tpu.memory_space<vmem>>, vector<1x128xf32>
    %179 = vector.broadcast %178 : vector<1x128xf32> to vector<4x128xf32>
    %180 = arith.addf %177, %179 : vector<4x128xf32>
    %c0_57 = arith.constant 0 : index
    %c0_58 = arith.constant 0 : index
    %181 = vector.load %arg4[%c0_57, %c0_58] : memref<4x128xf32, #tpu.memory_space<vmem>>, vector<4x128xf32>
    tpu.vector_store %arg4[%c0_57, %c0_58], %180 {strides = array<i32>} : memref<4x128xf32, #tpu.memory_space<vmem>>, vector<4x128xf32>,
    return
  }
  func.func @transform_0(%arg0: i32) -> (i32, i32) {
    %c0_i32 = arith.constant 0 : i32
    %c0_i32_0 = arith.constant 0 : i32
    return %arg0, %c0_i32 : i32, i32
  }
  func.func @transform_1(%arg0: i32) -> (i32, i32) {
    %c0_i32 = arith.constant 0 : i32
    %c0_i32_0 = arith.constant 0 : i32
    %c0_i32_1 = arith.constant 0 : i32
    return %c0_i32, %c0_i32_0 : i32, i32
  }
  func.func @transform_2(%arg0: i32) -> (i32, i32) {
    %c0_i32 = arith.constant 0 : i32
    %c0_i32_0 = arith.constant 0 : i32
    %c0_i32_1 = arith.constant 0 : i32
    return %c0_i32, %c0_i32_0 : i32, i32
  }
  func.func @transform_3(%arg0: i32) -> (i32, i32) {
    %c0_i32 = arith.constant 0 : i32
    %c0_i32_0 = arith.constant 0 : i32
    return %arg0, %c0_i32 : i32, i32
  }
}

</mosaic_0001>

<bundles_post_ra>
// kernel: tpu_custom_call.1
= control target key start
LH: loop header
LB: loop body
LE: loop exit
PB: predicated region body
PF: predicated region fallthrough
CT: control target
= control target key end

     0   :  { %8 = vsyncpa [#allocation3], 0  ;;  %s409_s0 = inlined_call_operand.hbm [shape: f32[4,128], index: 0, kind: input, shape index: {}]   ;;  %s410_s1 = inlined_call_operand.vmem [shape: f32[1,128], index: 1, kind: input, shape index: {}]   ;;  %s411_s2 = inlined_call_operand.vmem [shape: f32[1,128], index: 2, kind: input, shape index: {}]   ;;  %s412_s3 = inlined_call_operand.hbm [shape: f32[4,128], index: 3, kind: output, shape index: {}]  }
   0x1   :  { %9 = vsyncpa [#allocation4], 0  ;;  %s272_s12 = smov [#allocation2]   ;;  %s224_s16 = scalar_lea.hbm %s409_s0, 64 }
   0x2   :  { %s16_s13 = sshll.u32 %s272_s12, 4  ;;  %p225_p0 = scmp.ne.s32.totalorder %s409_s0, %s224_s16  ;;  %s17_s13 = int_to_ptr.vmem [resolvable:$true] %s16_s13 }
   0x3   :  { %p228_p1 = scmp.lt.u32.totalorder %s224_s16, %s409_s0 }
   0x5   :  { %p230_p2 = pnand %p228_p1, %p225_p0 }
   0x7   :  { %233 = shalt.err (!%p230_p2)
}
   0x8   :  { %s234_s21 = scalar_lea.vmem %s17_s13, 64  ;;  %p239_p4 = scmp.lt.s32.totalorder %s17_s13, %s17_s13 }
   0x9   :  { %p235_p3 = scmp.ne.s32.totalorder %s17_s13, %s234_s21  ;;  %p240_p5 = scmp.lt.s32.totalorder %s234_s21, %s234_s21 }
   0xb   :  { %p241_p6 = por %p240_p5, %p239_p4 }
   0xd   :  { %p242_p7 = pnand %p241_p6, %p235_p3 }
   0xf   :  { %245 = shalt.err (!%p242_p7)
}
  0x10   :  { %19 = dma.hbm_to_vmem [thread:$0]  %s409_s0, 64, %s17_s13, [#allocation3]  }
  0x11   :  { %268 = dma.done.wait [#allocation3], 64  }
  0x12   :  { %269 = vsyncadd [#allocation3], 4294967232  ;;  %v29_v0 = vlaneseq  ;;  %vm35_vm7 = vcmask 1043456   ;;  %v322_v4 = vld [vmem:[#allocation2] sm:$0xf]  ;;  %s273_s27 = smov [#allocation5]  }
  0x13   :  { %v28_v11 = vmul.f32 %v322_v4, %v322_v4  ;;  %v205_v3 = vld [vmem:[%s411_s2] ss:$0 sm:$0xff]  ;;  %s195_s28 = sshll.u32 %s273_s27, 4  ;;  %s196_s28 = int_to_ptr.vmem [resolvable:$true] %s195_s28 }
  0x14   :  { %v306_v1 = vand.u32 127, %v29_v0  ;;  %s246_s29 = scalar_lea.vmem %s196_s28, 64  ;;  %p251_p9 = scmp.lt.s32.totalorder %s196_s28, %s196_s28 }
  0x15   :  { %p247_p8 = scmp.ne.s32.totalorder %s196_s28, %s246_s29  ;;  %p252_p10 = scmp.lt.s32.totalorder %s246_s29, %s246_s29 }
  0x16   :  { %vm102_vm0 = vcmp.ge.s32.totalorder %v306_v1, 64  ;;  %vm103_vm1 = vcmp.lt.s32.totalorder %v306_v1, 96  ;;  %vm32_vm3 = vcmp.lt.s32.totalorder %v306_v1, 32  ;;  %vm136_vm4 = vcmp.ge.s32.totalorder %v306_v1, 96 }
  0x17   :  { %vm310_vm2 = vmand %vm102_vm0, %vm103_vm1  ;;  %vm68_vm5 = vcmp.ge.s32.totalorder %v306_v1, 32  ;;  %vm69_vm6 = vcmp.lt.s32.totalorder %v306_v1, 64  ;;  %v34_v6 = vsel %vm32_vm3, %v322_v4, 0.0  ;;  %v139_v7 = vsel %vm136_vm4, %v322_v4, 0.0  ;;  %p253_p11 = por %p252_p10, %p251_p9 }
  0x18   :  { %vm318_vm8 = vmand %vm68_vm5, %vm69_vm6  ;;  %v105_v5 = vsel %vm310_vm2, %v322_v4, 0.0  ;;  %v36_v10 = vsel %vm35_vm7, %v34_v6, 0.0  ;;  %v140_v12 = vsel %vm35_vm7, %v139_v7, 0.0  ;;  %v39_v15 = vsel %vm32_vm3, %v28_v11, 0.0 }
  0x19   :  { %v71_v8 = vsel %vm318_vm8, %v322_v4, 0.0  ;;  %v106_v9 = vsel %vm35_vm7, %v105_v5, 0.0  ;;  %37 = vadd.xlane.f32.xlu0 %v36_v10  ;;  %v75_v14 = vsel %vm318_vm8, %v28_v11, 0.0  ;;  %v40_v17 = vsel %vm35_vm7, %v39_v15, 0.0  ;;  %p254_p12 = pnand %p253_p11, %p247_p8 }
  0x1a   :  { %107 = vadd.xlane.f32.xlu1 %v106_v9  ;;  %v72_v13 = vsel %vm35_vm7, %v71_v8, 0.0  ;;  %v76_v16 = vsel %vm35_vm7, %v75_v14, 0.0  ;;  %v143_v18 = vsel %vm136_vm4, %v28_v11, 0.0  ;;  %v109_v19 = vsel %vm310_vm2, %v28_v11, 0.0 }
  0x1b   :  { %v144_v20 = vsel %vm35_vm7, %v143_v18, 0.0  ;;  %v110_v21 = vsel %vm35_vm7, %v109_v19, 0.0 }
  0x1d   :  { %73 = vadd.xlane.f32.xlu0 %v72_v13 }
  0x1e   :  { %141 = vadd.xlane.f32.xlu1 %v140_v12 }
  0x21   :  { %41 = vadd.xlane.f32.xlu0 %v40_v17 }
  0x22   :  { %77 = vadd.xlane.f32.xlu1 %v76_v16 }
  0x25   :  { %111 = vadd.xlane.f32.xlu0 %v110_v21 }
  0x26   :  { %145 = vadd.xlane.f32.xlu1 %v144_v20 }
  0xa6   :  { %v38_v23 = vpop.xlane.xlu0 %37 }
  0xa7   :  { %v108_v22 = vpop.xlane.xlu1 %107  ;;  %v354_v24 = vmul.f32 0.03125, %v38_v23 }
  0xa8   :  { %v356_v25 = vmul.f32 0.03125, %v108_v22 }
  0xa9   :  { %v45_v26 = vmul.f32 32.0, %v354_v24 }
  0xaa   :  { %v74_v28 = vpop.xlane.xlu0 %73  ;;  %v114_v34 = vmul.f32 32.0, %v356_v25 }
  0xab   :  { %v142_v27 = vpop.xlane.xlu1 %141  ;;  %v361_v30 = vmul.f32 0.03125, %v74_v28  ;;  %v46_v32 = vmul.f32 %v45_v26, %v354_v24 }
  0xac   :  { %v359_v29 = vmul.f32 0.03125, %v142_v27  ;;  %v115_v42 = vmul.f32 %v114_v34, %v356_v25 }
  0xad   :  { %v80_v31 = vmul.f32 32.0, %v361_v30 }
  0xae   :  { %v148_v33 = vmul.f32 32.0, %v359_v29  ;;  %v42_v36 = vpop.xlane.xlu0 %41 }
  0xaf   :  { %v78_v35 = vpop.xlane.xlu1 %77  ;;  %v81_v37 = vmul.f32 %v80_v31, %v361_v30  ;;  %v47_v38 = vsub.f32 %v42_v36, %v46_v32  ;;  %v66_v36 = vsel %vm32_vm3, %v354_v24, 0.0 }
  0xb0   :  { %v149_v41 = vmul.f32 %v148_v33, %v359_v29 }
  0xb1   :  { %v82_v39 = vsub.f32 %v78_v35, %v81_v37  ;;  %v49_v40 = vmul.f32 0.032258064, %v47_v38 }
  0xb2   :  { %v112_v44 = vpop.xlane.xlu0 %111 }
  0xb3   :  { %v146_v43 = vpop.xlane.xlu1 %145  ;;  %v83_v45 = vmul.f32 0.032258064, %v82_v39  ;;  %v50_v46 = vmax.f32 %v49_v40, 0.0  ;;  %v116_v48 = vsub.f32 %v112_v44, %v115_v42  ;;  %v100_v40 = vsel %vm318_vm8, %v361_v30, %v66_v36 }
  0xb4   :  { %v150_v47 = vsub.f32 %v146_v43, %v149_v41 }
  0xb5   :  { %v84_v49 = vmax.f32 %v83_v45, 0.0  ;;  %208 = vrsqrt.f32 %v50_v46  ;;  %v117_v51 = vmul.f32 0.032258064, %v116_v48  ;;  %vm53_vm9 = vcmp.eq.f32.partialorder %v50_v46, inf }
  0xb6   :  { %v151_v50 = vmul.f32 0.032258064, %v150_v47  ;;  %v56_v57 = vand.u32 2147483648, %v50_v46  ;;  %vm55_vm10 = vcmp.eq.f32.partialorder %v50_v46, 0.0 }
  0xb7   :  { %210 = vrsqrt.f32 %v84_v49  ;;  %v118_v53 = vmax.f32 %v117_v51, 0.0  ;;  %vm87_vm11 = vcmp.eq.f32.partialorder %v84_v49, inf  ;;  %v90_v60 = vand.u32 2147483648, %v84_v49 }
  0xb8   :  { %v152_v52 = vmax.f32 %v151_v50, 0.0  ;;  %vm89_vm12 = vcmp.eq.f32.partialorder %v84_v49, 0.0 }
  0xb9   :  { %vm121_vm15 = vcmp.eq.f32.partialorder %v118_v53, inf  ;;  %v124_v12 = vand.u32 2147483648, %v118_v53  ;;  %vm123_vm0 = vcmp.eq.f32.partialorder %v118_v53, 0.0 }
  0xba   :  { %212 = vrsqrt.f32 %v152_v52  ;;  %vm155_vm13 = vcmp.eq.f32.partialorder %v152_v52, inf  ;;  %v158_v9 = vand.u32 2147483648, %v152_v52  ;;  %vm157_vm14 = vcmp.eq.f32.partialorder %v152_v52, 0.0 }
  0xbb   :  { %214 = vrsqrt.f32 %v118_v53 }
  0xbf   :  { %v209_v54 = vpop.eup %208 }
  0xc0   :  { %v52_v55 = vmul.f32 %v209_v54, %v50_v46 }
  0xc1   :  { %v211_v56 = vpop.eup %210 }
  0xc2   :  { %v86_v58 = vmul.f32 %v211_v56, %v84_v49  ;;  %v54_v59 = vsel %vm53_vm9, %v50_v46, %v52_v55  ;;  %v134_v46 = vsel %vm310_vm2, %v356_v25, %v100_v40  ;;  %v204_v56 = vld [vmem:[%s410_s1] ss:$0 sm:$0xff] }
  0xc3   :  { %v57_v61 = vsel %vm55_vm10, %v56_v57, %v54_v59  ;;  %v168_v30 = vsel %vm136_vm4, %v359_v29, %v134_v46 }
  0xc4   :  { %v213_v62 = vpop.eup %212  ;;  %v88_v63 = vsel %vm87_vm11, %v84_v49, %v86_v58  ;;  %v58_v0 = vadd.f32 1e-06, %v57_v61  ;;  %v171_v25 = vsub.f32 %v322_v4, %v168_v30 }
  0xc5   :  { %v215_v5 = vpop.eup %214  ;;  %v91_v6 = vsel %vm89_vm12, %v90_v60, %v88_v63  ;;  %v154_v7 = vmul.f32 %v213_v62, %v152_v52 }
  0xc6   :  { %v92_v8 = vadd.f32 1e-06, %v91_v6  ;;  %216 = vrcp.f32 %v58_v0  ;;  %v120_v10 = vmul.f32 %v215_v5, %v118_v53 }
  0xc7   :  { %v156_v11 = vsel %vm155_vm13, %v152_v52, %v154_v7 }
  0xc8   :  { %218 = vrcp.f32 %v92_v8  ;;  %v122_v13 = vsel %vm121_vm15, %v118_v53, %v120_v10  ;;  %v159_v14 = vsel %vm157_vm14, %v158_v9, %v156_v11 }
  0xc9   :  { %v125_v15 = vsel %vm123_vm0, %v124_v12, %v122_v13  ;;  %v160_v16 = vadd.f32 1e-06, %v159_v14 }
  0xca   :  { %v126_v17 = vadd.f32 1e-06, %v125_v15 }
  0xcb   :  { %220 = vrcp.f32 %v160_v16 }
  0xcc   :  { %222 = vrcp.f32 %v126_v17 }
  0xd0   :  { %v217_v18 = vpop.eup %216 }
  0xd1   :  { %v60_v19 = vmul.f32 %v217_v18, %v58_v0 }
  0xd2   :  { %v219_v20 = vpop.eup %218 }
  0xd3   :  { %v61_v21 = vsub.f32 2.0, %v60_v19  ;;  %v94_v22 = vmul.f32 %v219_v20, %v92_v8 }
  0xd5   :  { %v221_v23 = vpop.eup %220  ;;  %v62_v26 = vmul.f32 %v217_v18, %v61_v21  ;;  %v95_v27 = vsub.f32 2.0, %v94_v22 }
  0xd6   :  { %v223_v28 = vpop.eup %222  ;;  %v162_v31 = vmul.f32 %v221_v23, %v160_v16 }
  0xd7   :  { %v63_v32 = vmul.f32 %v62_v26, %v58_v0  ;;  %v96_v33 = vmul.f32 %v219_v20, %v95_v27  ;;  %v128_v34 = vmul.f32 %v223_v28, %v126_v17 }
  0xd8   :  { %v163_v35 = vsub.f32 2.0, %v162_v31 }
  0xd9   :  { %v64_v37 = vsub.f32 2.0, %v63_v32  ;;  %v97_v38 = vmul.f32 %v96_v33, %v92_v8  ;;  %v129_v39 = vsub.f32 2.0, %v128_v34 }
  0xda   :  { %v164_v41 = vmul.f32 %v221_v23, %v163_v35 }
  0xdb   :  { %v65_v42 = vmul.f32 %v64_v37, %v62_v26  ;;  %v98_v43 = vsub.f32 2.0, %v97_v38  ;;  %v130_v44 = vmul.f32 %v223_v28, %v129_v39 }
  0xdc   :  { %v165_v45 = vmul.f32 %v164_v41, %v160_v16 }
  0xdd   :  { %v67_v47 = vsel %vm32_vm3, %v65_v42, 0.0  ;;  %v99_v24 = vmul.f32 %v98_v43, %v96_v33  ;;  %v131_v48 = vmul.f32 %v130_v44, %v126_v17 }
  0xde   :  { %v166_v49 = vsub.f32 2.0, %v165_v45 }
  0xdf   :  { %v132_v50 = vsub.f32 2.0, %v131_v48  ;;  %v101_v51 = vsel %vm318_vm8, %v99_v24, %v67_v47 }
  0xe0   :  { %v167_v52 = vmul.f32 %v166_v49, %v164_v41 }
  0xe1   :  { %v133_v53 = vmul.f32 %v132_v50, %v130_v44 }
  0xe3   :  { %v135_v54 = vsel %vm310_vm2, %v133_v53, %v101_v51 }
  0xe4   :  { %v169_v55 = vsel %vm136_vm4, %v167_v52, %v135_v54 }
  0xe5   :  { %v172_v57 = vmul.f32 %v171_v25, %v169_v55 }
  0xe7   :  { %v179_v29 = vmul.f32 %v204_v56, %v172_v57 }
  0xe9   :  { %v187_v58 = vadd.f32 %v205_v3, %v179_v29 }
  0xeb   :  { %188 = vst [vmem:[#allocation5] sm:$0xf] %v187_v58 }
  0xec   :  { %257 = shalt.err (!%p254_p12)
}
  0xed   :  { %s258_s4 = scalar_lea.hbm %s412_s3, 64 }
  0xee   :  { %p259_p13 = scmp.ne.s32.totalorder %s412_s3, %s258_s4  ;;  %p262_p0 = scmp.lt.u32.totalorder %s258_s4, %s412_s3 }
  0xf0   :  { %p264_p1 = pnand %p262_p0, %p259_p13 }
  0xf2   :  { %267 = shalt.err (!%p264_p1)
}
  0xf3   :  { %198 = dma.vmem_to_hbm [thread:$0]  %s196_s28, 64, %s412_s3, [#allocation4]  }
  0xf4   :  { %270 = dma.done.wait [#allocation4], 64  }
  0xf5   :  { %271 = vsyncadd [#allocation4], 4294967232 }
  0xf6   :  { %202 = vsyncpa [#allocation3], 1 }
  0xf7   :  { %203 = vsyncpa [#allocation4], 1 }

</bundles_post_ra>
